<compile_context>
chip_gen: v7x
topology: tpu7x:2x2x1
jax: 0.10.0
libtpu: 0.0.40
codegen_flags: <defaults>
</compile_context>

<pallas_src>
import jax
import jax.numpy as jnp
from jax.experimental import pallas as pl
from jax.experimental.pallas import tpu as pltpu

# Logical sizes from the PyTorch module.
IN_F = 42
HID_F = 84
OUT_F = 3

# TPU-padded sizes (sublane=8, lane=128).
PAD = 128
BIAS_ROW = 120  # 8-aligned spare row inside each padded weight tile
TB = 8          # batch tile (sublane multiple) for the batched path

# Invariants the bias-row folding relies on (guards future edits to the
# constants: the folded bias row must lie in the zero-padded region so it is
# inert in both dots and survives ReLU as exact zero in the activations).
assert BIAS_ROW % 8 == 0 and HID_F <= BIAS_ROW < PAD and OUT_F <= BIAS_ROW
assert IN_F <= BIAS_ROW


def _mlp_single_kernel(x_ref, w_ref, o_ref, xpad_ref):
    # x_ref   : (1, 42)        raw flattened input features
    # w_ref   : (2, 128, 128)  [0, :42, :84] = fc1.W^T, [0, 120, :84] = fc1.b
    #                          [1, :84, :3 ] = fc2.W^T, [1, 120, :3 ] = fc2.b
    # o_ref   : (1, 128)       lanes 0..2 = logits
    # xpad_ref: (1, 128)       VMEM scratch: zero-padded input row
    xpad_ref[...] = jnp.zeros_like(xpad_ref)
    xpad_ref[:, :IN_F] = x_ref[...]          # masked lane store of 42 features
    x = xpad_ref[...]

    # Layer 1: MXU matmul + exact f32 bias add on the VPU.
    # (x lane BIAS_ROW is 0, so the folded bias row is inert in the dot.)
    w1 = w_ref[0]
    b1 = w1[BIAS_ROW:BIAS_ROW + 1, :]
    h = jnp.dot(x, w1, preferred_element_type=jnp.float32) + b1
    h = jnp.maximum(h, 0.0)  # ReLU; padded hidden lanes (84..127) stay exactly 0

    # Layer 2: same trick (h lane BIAS_ROW is 0, bias row inert in the dot).
    w2 = w_ref[1]
    b2 = w2[BIAS_ROW:BIAS_ROW + 1, :]
    o_ref[...] = jnp.dot(h, w2, preferred_element_type=jnp.float32) + b2


def _mlp_batched_kernel(x_ref, w_ref, o_ref):
    # x_ref: (TB, 128) rows = samples, lanes 0..41 = features, rest 0 (wrapper)
    # w_ref: (2, 128, 128) resident across the whole grid
    # o_ref: (TB, 128) lanes 0..2 = logits per sample
    x = x_ref[...]
    w1 = w_ref[0]
    b1 = w1[BIAS_ROW:BIAS_ROW + 1, :]
    h = jnp.maximum(jnp.dot(x, w1, preferred_element_type=jnp.float32) + b1, 0.0)
    w2 = w_ref[1]
    b2 = w2[BIAS_ROW:BIAS_ROW + 1, :]
    o_ref[...] = jnp.dot(h, w2, preferred_element_type=jnp.float32) + b2


# Single-sample call: 2 inputs (raw features + packed weights), 1 custom call.
_mlp_single = pl.pallas_call(
    _mlp_single_kernel,
    out_shape=jax.ShapeDtypeStruct((1, PAD), jnp.float32),
    in_specs=[
        pl.BlockSpec(memory_space=pltpu.MemorySpace.VMEM),
        pl.BlockSpec(memory_space=pltpu.MemorySpace.VMEM),
    ],
    out_specs=pl.BlockSpec(memory_space=pltpu.MemorySpace.VMEM),
    scratch_shapes=[pltpu.VMEM((1, PAD), jnp.float32)],
)


def _make_batched_call(n_tiles):
    """Batched call: grid over batch tiles, weights resident across the grid."""
    return pl.pallas_call(
        _mlp_batched_kernel,
        out_shape=jax.ShapeDtypeStruct((n_tiles * TB, PAD), jnp.float32),
        grid_spec=pltpu.PrefetchScalarGridSpec(
            num_scalar_prefetch=0,
            grid=(n_tiles,),
            in_specs=[
                pl.BlockSpec((TB, PAD), lambda i: (i, 0)),
                pl.BlockSpec((2, PAD, PAD), lambda i: (0, 0, 0)),  # stay resident
            ],
            out_specs=pl.BlockSpec((TB, PAD), lambda i: (i, 0)),
        ),
        compiler_params=pltpu.CompilerParams(
            dimension_semantics=("parallel",)),  # v7x: shard batch over 2 TCs
    )


def init_params(key):
    """Deterministic init mimicking nn.Linear's uniform(-1/sqrt(fan_in), +)."""
    k1, k2, k3, k4 = jax.random.split(key, 4)
    bnd1 = 1.0 / jnp.sqrt(float(IN_F))
    bnd2 = 1.0 / jnp.sqrt(float(HID_F))
    # Stored as (in, out) = W^T of PyTorch's (out, in).
    w1 = jax.random.uniform(k1, (IN_F, HID_F), jnp.float32, -bnd1, bnd1)
    b1 = jax.random.uniform(k2, (HID_F,), jnp.float32, -bnd1, bnd1)
    w2 = jax.random.uniform(k3, (HID_F, OUT_F), jnp.float32, -bnd2, bnd2)
    b2 = jax.random.uniform(k4, (OUT_F,), jnp.float32, -bnd2, bnd2)
    return w1, b1, w2, b2


def prepare_params(params):
    """One-time padding/packing: fold (w, b) pairs into one (2, 128, 128) blob."""
    w1, b1, w2, b2 = params
    w1_pad = (
        jnp.zeros((PAD, PAD), jnp.float32)
        .at[:IN_F, :HID_F].set(w1)
        .at[BIAS_ROW, :HID_F].set(b1)
    )
    w2_pad = (
        jnp.zeros((PAD, PAD), jnp.float32)
        .at[:HID_F, :OUT_F].set(w2)
        .at[BIAS_ROW, :OUT_F].set(b2)
    )
    return jnp.stack([w1_pad, w2_pad], axis=0)


@jax.jit
def classifier_forward(x, w_packed):
    """x: any shape with 42 total elements (matches PyTorch x.flatten())."""
    xf = jnp.reshape(x, (1, -1)).astype(jnp.float32)
    # Trace-time-only shape check (won't catch runtime mismatches post-trace).
    assert xf.shape[1] == IN_F, "Classifier expects 42 input features"
    out_pad = _mlp_single(xf, w_packed)
    return out_pad[0, :OUT_F]  # shape (3,), matches PyTorch output


@jax.jit
def classifier_forward_batched(xs, w_packed):
    """Batched throughput path: xs has shape (B, 42); one grid, resident weights."""
    B = xs.shape[0]
    xsf = jnp.reshape(xs, (B, IN_F)).astype(jnp.float32)
    n_tiles = pl.cdiv(B, TB)
    x_pad = jnp.zeros((n_tiles * TB, PAD), jnp.float32).at[:B, :IN_F].set(xsf)
    out_pad = _make_batched_call(n_tiles)(x_pad, w_packed)
    return out_pad[:B, :OUT_F]


def _reference_forward(x, params):
    w1, b1, w2, b2 = params
    xf = jnp.reshape(x, (-1,)).astype(jnp.float32)
    h = jnp.maximum(xf @ w1 + b1, 0.0)
    return h @ w2 + b2


if __name__ == "__main__":
    key = jax.random.PRNGKey(0)
    k_param, k_x, k_xb = jax.random.split(key, 3)
    params = init_params(k_param)
    w_packed = prepare_params(params)  # hoisted out of the per-call path

    # Single-sample path: any input shape with 42 elements (x.flatten()).
    x = jax.random.normal(k_x, (6, 7), jnp.float32)
    out = jax.block_until_ready(classifier_forward(x, w_packed))
    ref = _reference_forward(x, params)
    assert out.shape == (OUT_F,)
    assert jnp.allclose(out, ref, atol=1e-5, rtol=1e-5), (out, ref)

    # Batched path (amortizes weight DMA / launch overhead across samples).
    xb = jax.random.normal(k_xb, (4, IN_F), jnp.float32)
    outb = jax.block_until_ready(classifier_forward_batched(xb, w_packed))
    refb = jnp.stack([_reference_forward(xb[i], params) for i in range(4)])
    assert outb.shape == (4, OUT_F)
    assert jnp.allclose(outb, refb, atol=1e-5, rtol=1e-5), (outb, refb)

    print("KERNEL_OK")
</pallas_src>

<mosaic_0001>
module attributes {stable_mosaic.version = 11 : i64} {
  func.func @_mlp_single_kernel(%arg0: memref<1x42xf32, #tpu.memory_space<vmem>>, %arg1: memref<2x128x128xf32, #tpu.memory_space<vmem>>, %arg2: memref<1x128xf32, #tpu.memory_space<vmem>>, %arg3: memref<1x128xf32, #tpu.memory_space<vmem>>) attributes {dimension_semantics = [], scalar_prefetch = 0 : i64, scratch_operands = 1 : i64, tpu.core_type = #tpu.core_type<tc>} {
    %cst = arith.constant 0.000000e+00 : f32
    %0 = vector.broadcast %cst : f32 to vector<1x128xf32>
    %c0 = arith.constant 0 : index
    %c0_0 = arith.constant 0 : index
    %1 = vector.load %arg3[%c0, %c0_0] : memref<1x128xf32, #tpu.memory_space<vmem>>, vector<1x128xf32>
    tpu.vector_store %arg3[%c0, %c0_0], %0 {strides = array<i32>} : memref<1x128xf32, #tpu.memory_space<vmem>>, vector<1x128xf32>,
    %c0_1 = arith.constant 0 : index
    %c0_2 = arith.constant 0 : index
    %2 = vector.load %arg0[%c0_1, %c0_2] : memref<1x42xf32, #tpu.memory_space<vmem>>, vector<1x42xf32>
    %c0_3 = arith.constant 0 : index
    %c0_4 = arith.constant 0 : index
    %3 = vector.load %arg3[%c0_3, %c0_4] : memref<1x128xf32, #tpu.memory_space<vmem>>, vector<1x42xf32>
    tpu.vector_store %arg3[%c0_3, %c0_4], %2 {strides = array<i32>} : memref<1x128xf32, #tpu.memory_space<vmem>>, vector<1x42xf32>,
    %c0_5 = arith.constant 0 : index
    %c0_6 = arith.constant 0 : index
    %4 = vector.load %arg3[%c0_5, %c0_6] : memref<1x128xf32, #tpu.memory_space<vmem>>, vector<1x128xf32>
    %c0_7 = arith.constant 0 : index
    %c0_8 = arith.constant 0 : index
    %c0_9 = arith.constant 0 : index
    %5 = vector.load %arg1[%c0_7, %c0_8, %c0_9] : memref<2x128x128xf32, #tpu.memory_space<vmem>>, vector<1x128x128xf32>
    %6 = vector.shape_cast %5 : vector<1x128x128xf32> to vector<128x128xf32>
    %7 = vector.extract_strided_slice %6 {offsets = [120, 0], sizes = [1, 128], strides = [1, 1]} : vector<128x128xf32> to vector<1x128xf32>
    %cst_10 = arith.constant dense<0.000000e+00> : vector<1x128xf32>
    %8 = tpu.matmul %4, %6, %cst_10 {dimension_numbers = #tpu.dot_dimension_numbers<[1], [0], [0], [1], [0, 0, 1, 1], [], []>} : vector<1x128xf32>, vector<128x128xf32>, vector<1x128xf32> -> vector<1x128xf32>
    %9 = arith.addf %8, %7 : vector<1x128xf32>
    %cst_11 = arith.constant 0.000000e+00 : f32
    %10 = vector.broadcast %cst_11 : f32 to vector<1x128xf32>
    %11 = arith.maximumf %9, %10 : vector<1x128xf32>
    %c1 = arith.constant 1 : index
    %c0_12 = arith.constant 0 : index
    %c0_13 = arith.constant 0 : index
    %12 = vector.load %arg1[%c1, %c0_12, %c0_13] : memref<2x128x128xf32, #tpu.memory_space<vmem>>, vector<1x128x128xf32>
    %13 = vector.shape_cast %12 : vector<1x128x128xf32> to vector<128x128xf32>
    %14 = vector.extract_strided_slice %13 {offsets = [120, 0], sizes = [1, 128], strides = [1, 1]} : vector<128x128xf32> to vector<1x128xf32>
    %cst_14 = arith.constant dense<0.000000e+00> : vector<1x128xf32>
    %15 = tpu.matmul %11, %13, %cst_14 {dimension_numbers = #tpu.dot_dimension_numbers<[1], [0], [0], [1], [0, 0, 1, 1], [], []>} : vector<1x128xf32>, vector<128x128xf32>, vector<1x128xf32> -> vector<1x128xf32>
    %16 = arith.addf %15, %14 : vector<1x128xf32>
    %c0_15 = arith.constant 0 : index
    %c0_16 = arith.constant 0 : index
    %17 = vector.load %arg2[%c0_15, %c0_16] : memref<1x128xf32, #tpu.memory_space<vmem>>, vector<1x128xf32>
    tpu.vector_store %arg2[%c0_15, %c0_16], %16 {strides = array<i32>} : memref<1x128xf32, #tpu.memory_space<vmem>>, vector<1x128xf32>,
    return
  }
}

</mosaic_0001>

<bundles_post_ra>
// kernel: classifier_forward.1
= control target key start
LH: loop header
LB: loop body
LE: loop exit
PB: predicated region body
PF: predicated region fallthrough
CT: control target
= control target key end

     0   :  { %7 = vsyncpa [#allocation4], 0  ;;  %s392_s9 = smov [#allocation3]   ;;  %s447_s0 = inlined_call_operand.vmem [shape: f32[1,42], index: 0, kind: input, shape index: {}]   ;;  %s448_s1 = inlined_call_operand.hbm [shape: f32[2,128,128], index: 1, kind: input, shape index: {}]   ;;  %s449_s2 = inlined_call_operand.vmem [shape: f32[1,128], index: 2, kind: output, shape index: {}]  }
   0x1   :  { %s15_s10 = sshll.u32 %s392_s9, 4  ;;  %s368_s13 = scalar_lea.hbm %s448_s1, 4096  ;;  %s16_s10 = int_to_ptr.vmem [resolvable:$true] %s15_s10 }
   0x2   :  { %p369_p0 = scmp.ne.s32.totalorder %s448_s1, %s368_s13  ;;  %p372_p1 = scmp.lt.u32.totalorder %s368_s13, %s448_s1 }
   0x4   :  { %p374_p2 = pnand %p372_p1, %p369_p0 }
   0x6   :  { %377 = shalt.err (!%p374_p2)
}
   0x7   :  { %s378_s18 = scalar_lea.vmem %s16_s10, 4096  ;;  %p383_p4 = scmp.lt.s32.totalorder %s16_s10, %s16_s10 }
   0x8   :  { %p379_p3 = scmp.ne.s32.totalorder %s16_s10, %s378_s18  ;;  %p384_p5 = scmp.lt.s32.totalorder %s378_s18, %s378_s18 }
   0xa   :  { %p385_p6 = por %p384_p5, %p383_p4 }
   0xc   :  { %p386_p7 = pnand %p385_p6, %p379_p3 }
   0xe   :  { %389 = shalt.err (!%p386_p7)
}
   0xf   :  { %s393_s19 = smov 128   ;;  %s394_s20 = smov 8  }
  0x10   :  { %21 = dma.hbm_to_vmem [thread:$0]  %s448_s1, 4096, %s16_s10, [#allocation4], %s393_s19, %s393_s19, %s394_s20  }
  0x11   :  { %390 = dma.done.wait [#allocation4], 4096  }
  0x12   :  { %391 = vsyncadd [#allocation4], 4294963200  ;;  %v395_v0 = vmov 0.0|0.0   ;;  %v396_v1 = vmov 0.0   ;;  %vm397_vm0 = vmmov 0   ;;  %v30_v2 = vld [vmem:[#allocation3] sm:$0xff] }
  0x13   :  { %314 = vmatprep.subr.bf16.mxu0 %v395_v0  ;;  %25 = vst [vmem:[#allocation2] sm:$0x1] %v396_v1  ;;  %276 = vmatprep.mubr.msk.f32.mxu0 %vm397_vm0, %v396_v1  ;;  %v31_v3 = vld [vmem:[#allocation3 + $0x8] sm:$0xff]  ;;  %v32_v4 = vld [vmem:[#allocation3 + $0x10] sm:$0xff]  ;;  %v33_v6 = vld [vmem:[#allocation3 + $0x18] sm:$0xff]  ;;  %vm27_vm1 = vcmask 335872  }
  0x14   :  { %338 = vmatprep.subr.bf16.mxu1 %v395_v0  ;;  %311 = vmatprep.mubr.msk.f32.mxu1 %vm397_vm0, %v396_v1  ;;  %v315_v5 = vpack.c.bf16 %v31_v3, %v30_v2  ;;  %v318_v7 = vpack.c.bf16 %v33_v6, %v32_v4  ;;  %v34_v8 = vld [vmem:[#allocation3 + $0x20] sm:$0xff]  ;;  %v35_v9 = vld [vmem:[#allocation3 + $0x28] sm:$0xff]  ;;  %v26_v10 = vld [vmem:[%s447_s0] sm:$0x1] }
  0x15   :  { %v118_v11 = vld [vmem:[#allocation3 + $0x80] sm:$0xff]  ;;  %28 = vst.msk [vmem:[#allocation2] sm:$0x1] %vm27_vm1, %v26_v10  ;;  %v119_v12 = vld [vmem:[#allocation3 + $0x88] sm:$0xff]  ;;  %v120_v13 = vld [vmem:[#allocation3 + $0x90] sm:$0xff]  ;;  %v321_v15 = vpack.c.bf16 %v35_v9, %v34_v8 }
  0x16   :  { %316 = vmatpush3.bf16.msra.mxu0 %v315_v5  ;;  %v121_v14 = vld [vmem:[#allocation3 + $0x98] sm:$0xff]  ;;  %v339_v16 = vpack.c.bf16 %v119_v12, %v118_v11  ;;  %v36_v17 = vld [vmem:[#allocation3 + $0x30] sm:$0xff]  ;;  %v122_v20 = vld [vmem:[#allocation3 + $0xa0] sm:$0xff] }
  0x17   :  { %317 = vmatprep.subr.bf16.mxu0 %v395_v0  ;;  %v37_v18 = vld [vmem:[#allocation3 + $0x38] sm:$0xff]  ;;  %v342_v19 = vpack.c.bf16 %v121_v14, %v120_v13  ;;  %v123_v21 = vld [vmem:[#allocation3 + $0xa8] sm:$0xff]  ;;  %v38_v23 = vld [vmem:[#allocation3 + $0x40] sm:$0xff] }
  0x18   :  { %340 = vmatpush3.bf16.msra.mxu1 %v339_v16  ;;  %v324_v22 = vpack.c.bf16 %v37_v18, %v36_v17  ;;  %v39_v24 = vld [vmem:[#allocation3 + $0x48] sm:$0xff]  ;;  %v345_v25 = vpack.c.bf16 %v123_v21, %v122_v20  ;;  %v124_v26 = vld [vmem:[#allocation3 + $0xb0] sm:$0xff]  ;;  %v125_v27 = vld [vmem:[#allocation3 + $0xb8] sm:$0xff] }
  0x19   :  { %341 = vmatprep.subr.bf16.mxu1 %v395_v0  ;;  %v327_v28 = vpack.c.bf16 %v39_v24, %v38_v23  ;;  %v40_v29 = vld [vmem:[#allocation3 + $0x50] sm:$0xff]  ;;  %v41_v30 = vld [vmem:[#allocation3 + $0x58] sm:$0xff]  ;;  %v348_v31 = vpack.c.bf16 %v125_v27, %v124_v26  ;;  %v126_v32 = vld [vmem:[#allocation3 + $0xc0] sm:$0xff] }
  0x1a   :  { %319 = vmatpush3.bf16.msra.mxu0 %v318_v7  ;;  %v127_v33 = vld [vmem:[#allocation3 + $0xc8] sm:$0xff]  ;;  %v330_v34 = vpack.c.bf16 %v41_v30, %v40_v29  ;;  %v42_v35 = vld [vmem:[#allocation3 + $0x60] sm:$0xff]  ;;  %v128_v38 = vld [vmem:[#allocation3 + $0xd0] sm:$0xff] }
  0x1b   :  { %320 = vmatprep.subr.bf16.mxu0 %v395_v0  ;;  %v43_v36 = vld [vmem:[#allocation3 + $0x68] sm:$0xff]  ;;  %v351_v37 = vpack.c.bf16 %v127_v33, %v126_v32  ;;  %v129_v39 = vld [vmem:[#allocation3 + $0xd8] sm:$0xff]  ;;  %v44_v41 = vld [vmem:[#allocation3 + $0x70] sm:$0xff] }
  0x1c   :  { %343 = vmatpush3.bf16.msra.mxu1 %v342_v19  ;;  %v333_v40 = vpack.c.bf16 %v43_v36, %v42_v35  ;;  %v45_v42 = vld [vmem:[#allocation3 + $0x78] sm:$0xff]  ;;  %v354_v43 = vpack.c.bf16 %v129_v39, %v128_v38  ;;  %v130_v44 = vld [vmem:[#allocation3 + $0xe0] sm:$0xff]  ;;  %v131_v45 = vld [vmem:[#allocation3 + $0xe8] sm:$0xff] }
  0x1d   :  { %344 = vmatprep.subr.bf16.mxu1 %v395_v0  ;;  %v336_v46 = vpack.c.bf16 %v45_v42, %v44_v41  ;;  %v357_v47 = vpack.c.bf16 %v131_v45, %v130_v44  ;;  %v29_v48 = vld [vmem:[#allocation2] sm:$0x1]  ;;  %v132_v49 = vld [vmem:[#allocation3 + $0xf0] sm:$0xff] }
  0x1e   :  { %322 = vmatpush3.bf16.msra.mxu0 %v321_v15  ;;  %v133_v50 = vld [vmem:[#allocation3 + $0xf8] sm:$0xff] }
  0x1f   :  { %323 = vmatprep.subr.bf16.mxu0 %v395_v0  ;;  %v360_v51 = vpack.c.bf16 %v133_v50, %v132_v49 }
  0x20   :  { %346 = vmatpush3.bf16.msra.mxu1 %v345_v25 }
  0x21   :  { %347 = vmatprep.subr.bf16.mxu1 %v395_v0 }
  0x22   :  { %325 = vmatpush3.bf16.msra.mxu0 %v324_v22 }
  0x23   :  { %326 = vmatprep.subr.bf16.mxu0 %v395_v0 }
  0x24   :  { %349 = vmatpush3.bf16.msra.mxu1 %v348_v31 }
  0x25   :  { %350 = vmatprep.subr.bf16.mxu1 %v395_v0 }
  0x26   :  { %328 = vmatpush3.bf16.msra.mxu0 %v327_v28 }
  0x27   :  { %329 = vmatprep.subr.bf16.mxu0 %v395_v0 }
  0x28   :  { %352 = vmatpush3.bf16.msra.mxu1 %v351_v37 }
  0x29   :  { %353 = vmatprep.subr.bf16.mxu1 %v395_v0 }
  0x2a   :  { %331 = vmatpush3.bf16.msra.mxu0 %v330_v34 }
  0x2b   :  { %332 = vmatprep.subr.bf16.mxu0 %v395_v0 }
  0x2c   :  { %355 = vmatpush3.bf16.msra.mxu1 %v354_v43 }
  0x2d   :  { %356 = vmatprep.subr.bf16.mxu1 %v395_v0 }
  0x2e   :  { %334 = vmatpush3.bf16.msra.mxu0 %v333_v40 }
  0x2f   :  { %335 = vmatprep.subr.bf16.mxu0 %v395_v0 }
  0x30   :  { %358 = vmatpush3.bf16.msra.mxu1 %v357_v47 }
  0x31   :  { %359 = vmatprep.subr.bf16.mxu1 %v395_v0 }
  0x32   :  { %337 = vmatpush3.bf16.msra.mxu0 %v336_v46 }
  0x34   :  { %361 = vmatpush3.bf16.msra.mxu1 %v360_v51 }
  0x35   :  { %277 = vmatmul.mubr.f32.vlgmr.msra.gmra.mrb[0].mxu0 %v29_v48 }
 0x108   :  { %v112_v52 = vpop.f32.mrb[0].mxu0 }
 0x109   :  { %v113_v53 = vadd.f32 %v112_v52, %v45_v42  ;;  %v278_v54 = vpop.f32.mrb[1].mxu0 }
 0x10b   :  { %v116_v55 = vmax.f32 %v113_v53, 0.0 }
 0x10d   :  { %312 = vmatmul.mubr.f32.vlgmr.msra.gmra.mrb[0].mxu1 %v116_v55 }
 0x1e0   :  { %v200_v56 = vpop.f32.mrb[0].mxu1 }
 0x1e1   :  { %v201_v57 = vadd.f32 %v200_v56, %v133_v50  ;;  %v313_v58 = vpop.f32.mrb[1].mxu1 }
 0x1e3   :  { %204 = vst [vmem:[%s449_s2] sm:$0x1] %v201_v57 }
 0x1e4   :  { %209 = vsyncpa [#allocation4], 1 }

</bundles_post_ra>
